<compile_context>
chip_gen: v5e
topology: v5e:2x2
jax: 0.10.0
libtpu: 0.0.40
codegen_flags: <defaults>
</compile_context>

<pallas_src>
import functools

import jax
import jax.numpy as jnp
from jax.experimental import pallas as pl
from jax.experimental.pallas import tpu as pltpu


# ----------------------------------------------------------------------------- kernel
def mlp_kernel(x_ref, w1_ref, b1_ref, w2_ref, b2_ref, w3_ref, b3_ref, o_ref):
    cdt = w1_ref.dtype  # compute dtype fed to the MXU (f32 or bf16)

    # Layer 1: Linear + ReLU  (MXU matmul, f32 accumulate; bias/ReLU on f32)
    h = jnp.dot(x_ref[...], w1_ref[...], preferred_element_type=jnp.float32)
    h = jnp.maximum(h + b1_ref[...], 0.0)

    # Layer 2: Linear + ReLU  (downcast only at the matmul boundary)
    h = jnp.dot(h.astype(cdt), w2_ref[...], preferred_element_type=jnp.float32)
    h = jnp.maximum(h + b2_ref[...], 0.0)

    # Output layer: Linear (no activation)
    o = jnp.dot(h.astype(cdt), w3_ref[...], preferred_element_type=jnp.float32)
    o_ref[...] = (o + b3_ref[...]).astype(o_ref.dtype)


# ----------------------------------------------------------------------------- wrapper
def _round_up(v: int, m: int) -> int:
    return (v + m - 1) // m * m


def _pad2(a, rows: int, cols: int, dtype):
    """Zero-pad a 2-D array to (rows, cols) and cast."""
    out = jnp.zeros((rows, cols), dtype)
    return out.at[: a.shape[0], : a.shape[1]].set(a.astype(dtype))


@functools.partial(jax.jit, static_argnames=("tile_m", "compute_dtype"))
def base_nn_forward(x, params, *, tile_m: int = 256, compute_dtype=jnp.float32):
    """Fused MLP forward.  x: (N, input_size).  params: [(W(in,out), b(1,out))]*3."""
    (w1, b1), (w2, b2), (w3, b3) = params
    N, D_in = x.shape
    H1, H2, D_out = w1.shape[1], w2.shape[1], w3.shape[1]

    # Lane-pad every feature dim to 128 (exact: padded cols/rows are zeros).
    D_in_p = _round_up(D_in, 128)
    H1_p = _round_up(H1, 128)
    H2_p = _round_up(H2, 128)
    D_out_p = _round_up(D_out, 128)

    # Row tile: multiple of 8, no bigger than the (padded) batch.
    tm = max(8, min(_round_up(tile_m, 8), _round_up(N, 8)))
    N_p = _round_up(N, tm)

    # One-time padding / casting in the wrapper.
    x_p = _pad2(x, N_p, D_in_p, compute_dtype)
    w1p = _pad2(w1, D_in_p, H1_p, compute_dtype)
    w2p = _pad2(w2, H1_p, H2_p, compute_dtype)
    w3p = _pad2(w3, H2_p, D_out_p, compute_dtype)
    b1p = _pad2(b1, 1, H1_p, jnp.float32)   # biases stay f32 (added in accumulator)
    b2p = _pad2(b2, 1, H2_p, jnp.float32)
    b3p = _pad2(b3, 1, D_out_p, jnp.float32)

    row_map = lambda i: (i, 0)
    rep_map = lambda i: (0, 0)  # weights stay resident; no re-DMA across steps

    out_p = pl.pallas_call(
        mlp_kernel,
        out_shape=jax.ShapeDtypeStruct((N_p, D_out_p), jnp.float32),
        grid_spec=pl.GridSpec(
            grid=(N_p // tm,),
            in_specs=[
                pl.BlockSpec((tm, D_in_p), row_map),      # x tile
                pl.BlockSpec((D_in_p, H1_p), rep_map),    # W1
                pl.BlockSpec((1, H1_p), rep_map),         # b1
                pl.BlockSpec((H1_p, H2_p), rep_map),      # W2
                pl.BlockSpec((1, H2_p), rep_map),         # b2
                pl.BlockSpec((H2_p, D_out_p), rep_map),   # W3
                pl.BlockSpec((1, D_out_p), rep_map),      # b3
            ],
            out_specs=pl.BlockSpec((tm, D_out_p), row_map),  # lane-dense output
        ),
        compiler_params=pltpu.CompilerParams(
            dimension_semantics=("parallel",),            # megacore on v7x
            vmem_limit_bytes=32 * 1024 * 1024,            # explicit, safe on v5e/v6e/v7x
        ),
    )(x_p, w1p, b1p, w2p, b2p, w3p, b3p)

    # TODO(synk): if hidden sizes ever grow so a single weight exceeds ~8-16 MiB,
    # add a K/N grid axis with a VMEM f32 accumulator (pl.when init/finalize).
    return out_p[:N, :D_out].astype(x.dtype)


# ----------------------------------------------------------------------------- params / reference
def init_params(key, input_size, hidden_size, output_size):
    """Mirror nn.Linear's uniform(-1/sqrt(fan_in), 1/sqrt(fan_in)) init.
    Weights stored as (in, out) — the transpose of PyTorch's (out, in)."""
    sizes = [input_size] + list(hidden_size) + [output_size]
    params = []
    for i in range(len(sizes) - 1):
        fan_in, fan_out = sizes[i], sizes[i + 1]
        key, kw, kb = jax.random.split(key, 3)
        bound = 1.0 / jnp.sqrt(fan_in)
        w = jax.random.uniform(kw, (fan_in, fan_out), jnp.float32, -bound, bound)
        b = jax.random.uniform(kb, (1, fan_out), jnp.float32, -bound, bound)
        params.append((w, b))
    return params


def reference_forward(x, params):
    (w1, b1), (w2, b2), (w3, b3) = params
    h = jnp.maximum(x @ w1 + b1, 0.0)
    h = jnp.maximum(h @ w2 + b2, 0.0)
    return h @ w3 + b3


# ----------------------------------------------------------------------------- demo
if __name__ == "__main__":
    # BaseNN(input_size=32, output_size=16, hidden_size=[64, 64]); batch N = 50
    # (N deliberately not a multiple of 8 to exercise the row-padding path).
    input_size, output_size, hidden_size = 32, 16, [64, 64]
    N = 50

    key = jax.random.PRNGKey(0)
    key, kx = jax.random.split(key)
    x = jax.random.normal(kx, (N, input_size), jnp.float32)
    params = init_params(key, input_size, hidden_size, output_size)

    ref = reference_forward(x, params)

    # f32 path: exact (padding is zero-padding, accumulation is f32).
    out_f32 = jax.block_until_ready(base_nn_forward(x, params, compute_dtype=jnp.float32))
    assert out_f32.shape == (N, output_size), out_f32.shape
    assert jnp.allclose(out_f32, ref, atol=1e-5, rtol=1e-5), "f32 mismatch vs reference"

    # bf16 MXU-input path (v6e/v7x friendly): f32 accumulation keeps it close.
    out_bf16 = jax.block_until_ready(base_nn_forward(x, params, compute_dtype=jnp.bfloat16))
    assert out_bf16.shape == (N, output_size), out_bf16.shape
    assert jnp.allclose(out_bf16, ref, atol=1e-1, rtol=1e-1), "bf16 mismatch vs reference"

    print("KERNEL_OK")
</pallas_src>

<mosaic_0001>
module attributes {stable_mosaic.version = 11 : i64} {
  func.func @mlp_kernel(%arg0: i32, %arg1: memref<56x128xf32, #tpu.memory_space<vmem>>, %arg2: memref<128x128xf32, #tpu.memory_space<vmem>>, %arg3: memref<1x128xf32, #tpu.memory_space<vmem>>, %arg4: memref<128x128xf32, #tpu.memory_space<vmem>>, %arg5: memref<1x128xf32, #tpu.memory_space<vmem>>, %arg6: memref<128x128xf32, #tpu.memory_space<vmem>>, %arg7: memref<1x128xf32, #tpu.memory_space<vmem>>, %arg8: memref<56x128xf32, #tpu.memory_space<vmem>>) attributes {dimension_semantics = [#tpu.dimension_semantics<parallel>], iteration_bounds = array<i64: 1>, scalar_prefetch = 0 : i64, scratch_operands = 0 : i64, tpu.core_type = #tpu.core_type<tc>, window_params = [{transform_indices = @transform_0, window_bounds = array<i64: 56, 128>}, {pipeline_mode = #tpu.pipeline_mode<synchronous>, transform_indices = @transform_1, window_bounds = array<i64: 128, 128>}, {pipeline_mode = #tpu.pipeline_mode<synchronous>, transform_indices = @transform_2, window_bounds = array<i64: 1, 128>}, {pipeline_mode = #tpu.pipeline_mode<synchronous>, transform_indices = @transform_3, window_bounds = array<i64: 128, 128>}, {pipeline_mode = #tpu.pipeline_mode<synchronous>, transform_indices = @transform_4, window_bounds = array<i64: 1, 128>}, {pipeline_mode = #tpu.pipeline_mode<synchronous>, transform_indices = @transform_5, window_bounds = array<i64: 128, 128>}, {pipeline_mode = #tpu.pipeline_mode<synchronous>, transform_indices = @transform_6, window_bounds = array<i64: 1, 128>}, {transform_indices = @transform_7, window_bounds = array<i64: 56, 128>}]} {
    %c0 = arith.constant 0 : index
    %c0_0 = arith.constant 0 : index
    %0 = vector.load %arg1[%c0, %c0_0] : memref<56x128xf32, #tpu.memory_space<vmem>>, vector<56x128xf32>
    %c0_1 = arith.constant 0 : index
    %c0_2 = arith.constant 0 : index
    %1 = vector.load %arg2[%c0_1, %c0_2] : memref<128x128xf32, #tpu.memory_space<vmem>>, vector<128x128xf32>
    %cst = arith.constant dense<0.000000e+00> : vector<56x128xf32>
    %2 = tpu.matmul %0, %1, %cst {dimension_numbers = #tpu.dot_dimension_numbers<[1], [0], [0], [1], [0, 0, 1, 1], [], []>} : vector<56x128xf32>, vector<128x128xf32>, vector<56x128xf32> -> vector<56x128xf32>
    %c0_3 = arith.constant 0 : index
    %c0_4 = arith.constant 0 : index
    %3 = vector.load %arg3[%c0_3, %c0_4] : memref<1x128xf32, #tpu.memory_space<vmem>>, vector<1x128xf32>
    %4 = vector.broadcast %3 : vector<1x128xf32> to vector<56x128xf32>
    %5 = arith.addf %2, %4 : vector<56x128xf32>
    %cst_5 = arith.constant 0.000000e+00 : f32
    %6 = vector.broadcast %cst_5 : f32 to vector<56x128xf32>
    %7 = arith.maximumf %5, %6 : vector<56x128xf32>
    %c0_6 = arith.constant 0 : index
    %c0_7 = arith.constant 0 : index
    %8 = vector.load %arg4[%c0_6, %c0_7] : memref<128x128xf32, #tpu.memory_space<vmem>>, vector<128x128xf32>
    %cst_8 = arith.constant dense<0.000000e+00> : vector<56x128xf32>
    %9 = tpu.matmul %7, %8, %cst_8 {dimension_numbers = #tpu.dot_dimension_numbers<[1], [0], [0], [1], [0, 0, 1, 1], [], []>} : vector<56x128xf32>, vector<128x128xf32>, vector<56x128xf32> -> vector<56x128xf32>
    %c0_9 = arith.constant 0 : index
    %c0_10 = arith.constant 0 : index
    %10 = vector.load %arg5[%c0_9, %c0_10] : memref<1x128xf32, #tpu.memory_space<vmem>>, vector<1x128xf32>
    %11 = vector.broadcast %10 : vector<1x128xf32> to vector<56x128xf32>
    %12 = arith.addf %9, %11 : vector<56x128xf32>
    %cst_11 = arith.constant 0.000000e+00 : f32
    %13 = vector.broadcast %cst_11 : f32 to vector<56x128xf32>
    %14 = arith.maximumf %12, %13 : vector<56x128xf32>
    %c0_12 = arith.constant 0 : index
    %c0_13 = arith.constant 0 : index
    %15 = vector.load %arg6[%c0_12, %c0_13] : memref<128x128xf32, #tpu.memory_space<vmem>>, vector<128x128xf32>
    %cst_14 = arith.constant dense<0.000000e+00> : vector<56x128xf32>
    %16 = tpu.matmul %14, %15, %cst_14 {dimension_numbers = #tpu.dot_dimension_numbers<[1], [0], [0], [1], [0, 0, 1, 1], [], []>} : vector<56x128xf32>, vector<128x128xf32>, vector<56x128xf32> -> vector<56x128xf32>
    %c0_15 = arith.constant 0 : index
    %c0_16 = arith.constant 0 : index
    %17 = vector.load %arg7[%c0_15, %c0_16] : memref<1x128xf32, #tpu.memory_space<vmem>>, vector<1x128xf32>
    %18 = vector.broadcast %17 : vector<1x128xf32> to vector<56x128xf32>
    %19 = arith.addf %16, %18 : vector<56x128xf32>
    %c0_17 = arith.constant 0 : index
    %c0_18 = arith.constant 0 : index
    %20 = vector.load %arg8[%c0_17, %c0_18] : memref<56x128xf32, #tpu.memory_space<vmem>>, vector<56x128xf32>
    tpu.vector_store %arg8[%c0_17, %c0_18], %19 {strides = array<i32>} : memref<56x128xf32, #tpu.memory_space<vmem>>, vector<56x128xf32>,
    return
  }
  func.func @transform_0(%arg0: i32) -> (i32, i32) {
    %c0_i32 = arith.constant 0 : i32
    %c0_i32_0 = arith.constant 0 : i32
    return %arg0, %c0_i32 : i32, i32
  }
  func.func @transform_1(%arg0: i32) -> (i32, i32) {
    %c0_i32 = arith.constant 0 : i32
    %c0_i32_0 = arith.constant 0 : i32
    %c0_i32_1 = arith.constant 0 : i32
    return %c0_i32, %c0_i32_0 : i32, i32
  }
  func.func @transform_2(%arg0: i32) -> (i32, i32) {
    %c0_i32 = arith.constant 0 : i32
    %c0_i32_0 = arith.constant 0 : i32
    %c0_i32_1 = arith.constant 0 : i32
    return %c0_i32, %c0_i32_0 : i32, i32
  }
  func.func @transform_3(%arg0: i32) -> (i32, i32) {
    %c0_i32 = arith.constant 0 : i32
    %c0_i32_0 = arith.constant 0 : i32
    %c0_i32_1 = arith.constant 0 : i32
    return %c0_i32, %c0_i32_0 : i32, i32
  }
  func.func @transform_4(%arg0: i32) -> (i32, i32) {
    %c0_i32 = arith.constant 0 : i32
    %c0_i32_0 = arith.constant 0 : i32
    %c0_i32_1 = arith.constant 0 : i32
    return %c0_i32, %c0_i32_0 : i32, i32
  }
  func.func @transform_5(%arg0: i32) -> (i32, i32) {
    %c0_i32 = arith.constant 0 : i32
    %c0_i32_0 = arith.constant 0 : i32
    %c0_i32_1 = arith.constant 0 : i32
    return %c0_i32, %c0_i32_0 : i32, i32
  }
  func.func @transform_6(%arg0: i32) -> (i32, i32) {
    %c0_i32 = arith.constant 0 : i32
    %c0_i32_0 = arith.constant 0 : i32
    %c0_i32_1 = arith.constant 0 : i32
    return %c0_i32, %c0_i32_0 : i32, i32
  }
  func.func @transform_7(%arg0: i32) -> (i32, i32) {
    %c0_i32 = arith.constant 0 : i32
    %c0_i32_0 = arith.constant 0 : i32
    return %arg0, %c0_i32 : i32, i32
  }
}

</mosaic_0001>

<bundles_post_ra>
// kernel: base_nn_forward.1
= control target key start
LH: loop header
LB: loop body
LE: loop exit
PB: predicated region body
PF: predicated region fallthrough
CT: control target
= control target key end

     0   :  { %s502_s1 = inlined_call_operand.vmem [shape: f32[128,128], index: 1, kind: input, shape index: {}]   ;;  %s503_s2 = inlined_call_operand.vmem [shape: f32[1,128], index: 2, kind: input, shape index: {}]   ;;  %s504_s0 = inlined_call_operand.vmem [shape: f32[56,128], index: 0, kind: input, shape index: {}]   ;;  %s505_s3 = inlined_call_operand.vmem [shape: f32[128,128], index: 3, kind: input, shape index: {}]   ;;  %s506_s4 = inlined_call_operand.vmem [shape: f32[1,128], index: 4, kind: input, shape index: {}]   ;;  %s507_s5 = inlined_call_operand.vmem [shape: f32[128,128], index: 5, kind: input, shape index: {}]   ;;  %s508_s6 = inlined_call_operand.vmem [shape: f32[1,128], index: 6, kind: input, shape index: {}]   ;;  %s509_s7 = inlined_call_operand.vmem [shape: f32[56,128], index: 7, kind: output, shape index: {}]  }
   0x1   :  { %v48_v0 = vld [vmem:[%s502_s1 + $0x78] sm:$0xff]  ;;  %v47_v1 = vld [vmem:[%s502_s1 + $0x70] sm:$0xff]  ;;  %v46_v2 = vld [vmem:[%s502_s1 + $0x68] sm:$0xff] }
   0x2   :  { %53 = vmatpush.msra.mxu0 %v48_v0  ;;  %232 = vmatpush.msra.mxu3 %v48_v0  ;;  %v45_v3 = vld [vmem:[%s502_s1 + $0x60] sm:$0xff]  ;;  %v44_v4 = vld [vmem:[%s502_s1 + $0x58] sm:$0xff]  ;;  %v43_v5 = vld [vmem:[%s502_s1 + $0x50] sm:$0xff] }
   0x3   :  { %v42_v6 = vld [vmem:[%s502_s1 + $0x48] sm:$0xff]  ;;  %v41_v7 = vld [vmem:[%s502_s1 + $0x40] sm:$0xff]  ;;  %v40_v8 = vld [vmem:[%s502_s1 + $0x38] sm:$0xff] }
   0x4   :  { %54 = vmatpush.msra.mxu0 %v47_v1  ;;  %233 = vmatpush.msra.mxu3 %v47_v1  ;;  %v39_v9 = vld [vmem:[%s502_s1 + $0x30] sm:$0xff]  ;;  %v38_v10 = vld [vmem:[%s502_s1 + $0x28] sm:$0xff]  ;;  %v37_v11 = vld [vmem:[%s502_s1 + $0x20] sm:$0xff] }
   0x5   :  { %v36_v12 = vld [vmem:[%s502_s1 + $0x18] sm:$0xff]  ;;  %v35_v13 = vld [vmem:[%s502_s1 + $0x10] sm:$0xff]  ;;  %v34_v14 = vld [vmem:[%s502_s1 + $0x8] sm:$0xff] }
   0x6   :  { %55 = vmatpush.msra.mxu0 %v46_v2  ;;  %234 = vmatpush.msra.mxu3 %v46_v2  ;;  %v33_v15 = vld [vmem:[%s502_s1] sm:$0xff]  ;;  %v27_v17 = vld [vmem:[%s504_s0 + $0x8] sm:$0xff]  ;;  %v28_v18 = vld [vmem:[%s504_s0 + $0x10] sm:$0xff] }
   0x7   :  { %v26_v16 = vld [vmem:[%s504_s0] sm:$0xff]  ;;  %v113_v19 = vld [vmem:[%s505_s3 + $0x78] sm:$0xff]  ;;  %v112_v20 = vld [vmem:[%s505_s3 + $0x70] sm:$0xff] }
   0x8   :  { %56 = vmatpush.msra.mxu0 %v45_v3  ;;  %235 = vmatpush.msra.mxu3 %v45_v3  ;;  %v111_v21 = vld [vmem:[%s505_s3 + $0x68] sm:$0xff]  ;;  %v110_v22 = vld [vmem:[%s505_s3 + $0x60] sm:$0xff]  ;;  %v29_v23 = vld [vmem:[%s504_s0 + $0x18] sm:$0xff] }
   0x9   :  { %248 = vmatpush.msra.mxu1 %v113_v19  ;;  %v109_v24 = vld [vmem:[%s505_s3 + $0x58] sm:$0xff]  ;;  %v108_v25 = vld [vmem:[%s505_s3 + $0x50] sm:$0xff]  ;;  %v107_v26 = vld [vmem:[%s505_s3 + $0x48] sm:$0xff] }
   0xa   :  { %57 = vmatpush.msra.mxu0 %v44_v4  ;;  %236 = vmatpush.msra.mxu3 %v44_v4  ;;  %v106_v27 = vld [vmem:[%s505_s3 + $0x40] sm:$0xff]  ;;  %v105_v29 = vld [vmem:[%s505_s3 + $0x38] sm:$0xff]  ;;  %v104_v30 = vld [vmem:[%s505_s3 + $0x30] sm:$0xff] }
   0xb   :  { %249 = vmatpush.msra.mxu1 %v112_v20  ;;  %v30_v28 = vld [vmem:[%s504_s0 + $0x20] sm:$0xff]  ;;  %v103_v31 = vld [vmem:[%s505_s3 + $0x28] sm:$0xff]  ;;  %v101_v34 = vld [vmem:[%s505_s3 + $0x18] sm:$0xff] }
   0xc   :  { %58 = vmatpush.msra.mxu0 %v43_v5  ;;  %237 = vmatpush.msra.mxu3 %v43_v5  ;;  %v102_v32 = vld [vmem:[%s505_s3 + $0x20] sm:$0xff]  ;;  %v31_v33 = vld [vmem:[%s504_s0 + $0x28] sm:$0xff]  ;;  %v32_v35 = vld [vmem:[%s504_s0 + $0x30] sm:$0xff] }
   0xd   :  { %250 = vmatpush.msra.mxu1 %v111_v21  ;;  %v100_v36 = vld [vmem:[%s505_s3 + $0x10] sm:$0xff]  ;;  %v99_v37 = vld [vmem:[%s505_s3 + $0x8] sm:$0xff]  ;;  %v98_v38 = vld [vmem:[%s505_s3] sm:$0xff] }
   0xe   :  { %59 = vmatpush.msra.mxu0 %v42_v6  ;;  %238 = vmatpush.msra.mxu3 %v42_v6  ;;  %v264_v39 = vld [vmem:[%s503_s2] ss:$0 sm:$0xff]  ;;  %v178_v49 = vld [vmem:[%s507_s5 + $0x78] sm:$0xff]  ;;  %v177_v50 = vld [vmem:[%s507_s5 + $0x70] sm:$0xff] }
   0xf   :  { %251 = vmatpush.msra.mxu1 %v110_v22  ;;  %183 = vmatpush.msra.mxu2 %v178_v49  ;;  %v176_v51 = vld [vmem:[%s507_s5 + $0x68] sm:$0xff]  ;;  %v175_v54 = vld [vmem:[%s507_s5 + $0x60] sm:$0xff]  ;;  %v174_v56 = vld [vmem:[%s507_s5 + $0x58] sm:$0xff] }
  0x10   :  { %60 = vmatpush.msra.mxu0 %v41_v7  ;;  %239 = vmatpush.msra.mxu3 %v41_v7  ;;  %v173_v57 = vld [vmem:[%s507_s5 + $0x50] sm:$0xff]  ;;  %v172_v58 = vld [vmem:[%s507_s5 + $0x48] sm:$0xff]  ;;  %v171_v61 = vld [vmem:[%s507_s5 + $0x40] sm:$0xff] }
  0x11   :  { %252 = vmatpush.msra.mxu1 %v109_v24  ;;  %184 = vmatpush.msra.mxu2 %v177_v50  ;;  %v170_v63 = vld [vmem:[%s507_s5 + $0x38] sm:$0xff]  ;;  %v169_v0 = vld [vmem:[%s507_s5 + $0x30] sm:$0xff]  ;;  %v168_v1 = vld [vmem:[%s507_s5 + $0x28] sm:$0xff] }
  0x12   :  { %61 = vmatpush.msra.mxu0 %v40_v8  ;;  %240 = vmatpush.msra.mxu3 %v40_v8  ;;  %v167_v4 = vld [vmem:[%s507_s5 + $0x20] sm:$0xff]  ;;  %v166_v6 = vld [vmem:[%s507_s5 + $0x18] sm:$0xff] }
  0x13   :  { %253 = vmatpush.msra.mxu1 %v108_v25  ;;  %185 = vmatpush.msra.mxu2 %v176_v51 }
  0x14   :  { %62 = vmatpush.msra.mxu0 %v39_v9  ;;  %241 = vmatpush.msra.mxu3 %v39_v9 }
  0x15   :  { %254 = vmatpush.msra.mxu1 %v107_v26  ;;  %186 = vmatpush.msra.mxu2 %v175_v54 }
  0x16   :  { %63 = vmatpush.msra.mxu0 %v38_v10  ;;  %242 = vmatpush.msra.mxu3 %v38_v10  ;;  %v165_v10 = vld [vmem:[%s507_s5 + $0x10] sm:$0xff] }
  0x17   :  { %255 = vmatpush.msra.mxu1 %v106_v27  ;;  %187 = vmatpush.msra.mxu2 %v174_v56 }
  0x18   :  { %64 = vmatpush.msra.mxu0 %v37_v11  ;;  %243 = vmatpush.msra.mxu3 %v37_v11  ;;  %v164_v11 = vld [vmem:[%s507_s5 + $0x8] sm:$0xff] }
  0x19   :  { %256 = vmatpush.msra.mxu1 %v105_v29  ;;  %188 = vmatpush.msra.mxu2 %v173_v57 }
  0x1a   :  { %65 = vmatpush.msra.mxu0 %v36_v12  ;;  %244 = vmatpush.msra.mxu3 %v36_v12  ;;  %v163_v12 = vld [vmem:[%s507_s5] sm:$0xff] }
  0x1b   :  { %257 = vmatpush.msra.mxu1 %v104_v30  ;;  %189 = vmatpush.msra.mxu2 %v172_v58 }
  0x1c   :  { %66 = vmatpush.msra.mxu0 %v35_v13  ;;  %245 = vmatpush.msra.mxu3 %v35_v13  ;;  %v265_v13 = vld [vmem:[%s506_s4] ss:$0 sm:$0xff] }
  0x1d   :  { %258 = vmatpush.msra.mxu1 %v103_v31  ;;  %190 = vmatpush.msra.mxu2 %v171_v61 }
  0x1e   :  { %67 = vmatpush.msra.mxu0 %v34_v14  ;;  %246 = vmatpush.msra.mxu3 %v34_v14 }
  0x1f   :  { %259 = vmatpush.msra.mxu1 %v102_v32  ;;  %191 = vmatpush.msra.mxu2 %v170_v63 }
  0x20   :  { %68 = vmatpush.msra.mxu0 %v33_v15  ;;  %247 = vmatpush.msra.mxu3 %v33_v15 }
  0x21   :  { %69 = vmatmul.f32.vlgmr.msra.gmra.mxu0 %v26_v16  ;;  %72 = vmatmul.f32.vlgmr.msra.gmra.mxu3 %v27_v17 }
  0x22   :  { %118 = vmatpush.msrb.mxu0 %v113_v19  ;;  %260 = vmatpush.msra.mxu1 %v101_v34 }
  0x23   :  { %192 = vmatpush.msra.mxu2 %v169_v0 }
  0x24   :  { %119 = vmatpush.msrb.mxu0 %v112_v20  ;;  %261 = vmatpush.msra.mxu1 %v100_v36 }
  0x25   :  { %193 = vmatpush.msra.mxu2 %v168_v1 }
  0x26   :  { %120 = vmatpush.msrb.mxu0 %v111_v21  ;;  %262 = vmatpush.msra.mxu1 %v99_v37 }
  0x27   :  { %194 = vmatpush.msra.mxu2 %v167_v4 }
  0x28   :  { %121 = vmatpush.msrb.mxu0 %v110_v22  ;;  %263 = vmatpush.msra.mxu1 %v98_v38 }
  0x29   :  { %75 = vmatmul.f32.gmra.mxu3 %v28_v18  ;;  %195 = vmatpush.msra.mxu2 %v166_v6 }
  0x2a   :  { %122 = vmatpush.msrb.mxu0 %v109_v24 }
  0x2b   :  { %196 = vmatpush.msra.mxu2 %v165_v10 }
  0x2c   :  { %123 = vmatpush.msrb.mxu0 %v108_v25 }
  0x2d   :  { %197 = vmatpush.msra.mxu2 %v164_v11 }
  0x2e   :  { %124 = vmatpush.msrb.mxu0 %v107_v26 }
  0x2f   :  { %198 = vmatpush.msra.mxu2 %v163_v12 }
  0x30   :  { %125 = vmatpush.msrb.mxu0 %v106_v27 }
  0x31   :  { %78 = vmatmul.f32.gmra.mxu3 %v29_v23 }
  0x32   :  { %126 = vmatpush.msrb.mxu0 %v105_v29 }
  0x34   :  { %127 = vmatpush.msrb.mxu0 %v104_v30 }
  0x36   :  { %128 = vmatpush.msrb.mxu0 %v103_v31 }
  0x38   :  { %129 = vmatpush.msrb.mxu0 %v102_v32 }
  0x39   :  { %81 = vmatmul.f32.gmra.mxu3 %v30_v28 }
  0x3a   :  { %130 = vmatpush.msrb.mxu0 %v101_v34 }
  0x3c   :  { %131 = vmatpush.msrb.mxu0 %v100_v36 }
  0x3e   :  { %132 = vmatpush.msrb.mxu0 %v99_v37 }
  0x40   :  { %133 = vmatpush.msrb.mxu0 %v98_v38 }
  0x41   :  { %84 = vmatmul.f32.gmra.mxu3 %v31_v33 }
  0x49   :  { %87 = vmatmul.f32.gmra.mxu3 %v32_v35  ;;  %v266_v35 = vld [vmem:[%s508_s6] ss:$0 sm:$0xff] }
  0x9e   :  { %v70_v40 = vpop.f32.mrf.mxu0 }
  0x9f   :  { %v71_v41 = vadd.f32 %v264_v39, %v70_v40 }
  0xa1   :  { %v91_v42 = vmax.f32 %v71_v41, 0.0 }
  0xa3   :  { %134 = vmatmul.f32.vlgmr.msrb.gmra.mxu0 %v91_v42 }
  0xa4   :  { %v73_v43 = vpop.f32.mrf.mxu3 }
  0xa5   :  { %v74_v44 = vadd.f32 %v264_v39, %v73_v43 }
  0xa7   :  { %v92_v45 = vmax.f32 %v74_v44, 0.0 }
  0xa9   :  { %137 = vmatmul.f32.vlgmr.msra.gmra.mxu1 %v92_v45 }
  0xac   :  { %v76_v46 = vpop.f32.mrf.mxu3 }
  0xad   :  { %v77_v47 = vadd.f32 %v264_v39, %v76_v46 }
  0xaf   :  { %v93_v48 = vmax.f32 %v77_v47, 0.0 }
  0xb1   :  { %140 = vmatmul.f32.gmra.mxu1 %v93_v48 }
  0xb4   :  { %v79_v52 = vpop.f32.mrf.mxu3 }
  0xb5   :  { %v80_v53 = vadd.f32 %v264_v39, %v79_v52 }
  0xb7   :  { %v94_v55 = vmax.f32 %v80_v53, 0.0 }
  0xb9   :  { %143 = vmatmul.f32.gmra.mxu1 %v94_v55 }
  0xbc   :  { %v82_v59 = vpop.f32.mrf.mxu3 }
  0xbd   :  { %v83_v60 = vadd.f32 %v264_v39, %v82_v59 }
  0xbf   :  { %v95_v62 = vmax.f32 %v83_v60, 0.0 }
  0xc1   :  { %146 = vmatmul.f32.gmra.mxu1 %v95_v62 }
  0xc4   :  { %v85_v2 = vpop.f32.mrf.mxu3 }
  0xc5   :  { %v86_v3 = vadd.f32 %v264_v39, %v85_v2 }
  0xc7   :  { %v96_v5 = vmax.f32 %v86_v3, 0.0 }
  0xc9   :  { %149 = vmatmul.f32.gmra.mxu1 %v96_v5 }
  0xcc   :  { %v88_v7 = vpop.f32.mrf.mxu3 }
  0xcd   :  { %v89_v8 = vadd.f32 %v264_v39, %v88_v7 }
  0xcf   :  { %v97_v9 = vmax.f32 %v89_v8, 0.0 }
  0xd1   :  { %152 = vmatmul.f32.gmra.mxu1 %v97_v9 }
 0x120   :  { %v135_v14 = vpop.f32.mrf.mxu0 }
 0x121   :  { %v136_v15 = vadd.f32 %v265_v13, %v135_v14 }
 0x123   :  { %v156_v16 = vmax.f32 %v136_v15, 0.0 }
 0x125   :  { %199 = vmatmul.f32.vlgmr.msra.gmra.mxu2 %v156_v16 }
 0x126   :  { %v138_v17 = vpop.f32.mrf.mxu1 }
 0x127   :  { %v139_v18 = vadd.f32 %v265_v13, %v138_v17 }
 0x129   :  { %v157_v19 = vmax.f32 %v139_v18, 0.0 }
 0x12d   :  { %202 = vmatmul.f32.gmra.mxu2 %v157_v19 }
 0x12e   :  { %v141_v20 = vpop.f32.mrf.mxu1 }
 0x12f   :  { %v142_v21 = vadd.f32 %v265_v13, %v141_v20 }
 0x131   :  { %v158_v22 = vmax.f32 %v142_v21, 0.0 }
 0x135   :  { %205 = vmatmul.f32.gmra.mxu2 %v158_v22 }
 0x136   :  { %v144_v23 = vpop.f32.mrf.mxu1 }
 0x137   :  { %v145_v24 = vadd.f32 %v265_v13, %v144_v23 }
 0x139   :  { %v159_v25 = vmax.f32 %v145_v24, 0.0 }
 0x13d   :  { %208 = vmatmul.f32.gmra.mxu2 %v159_v25 }
 0x13e   :  { %v147_v26 = vpop.f32.mrf.mxu1 }
 0x13f   :  { %v148_v27 = vadd.f32 %v265_v13, %v147_v26 }
 0x141   :  { %v160_v28 = vmax.f32 %v148_v27, 0.0 }
 0x145   :  { %211 = vmatmul.f32.gmra.mxu2 %v160_v28 }
 0x146   :  { %v150_v29 = vpop.f32.mrf.mxu1 }
 0x147   :  { %v151_v30 = vadd.f32 %v265_v13, %v150_v29 }
 0x149   :  { %v161_v31 = vmax.f32 %v151_v30, 0.0 }
 0x14d   :  { %214 = vmatmul.f32.gmra.mxu2 %v161_v31 }
 0x14e   :  { %v153_v32 = vpop.f32.mrf.mxu1 }
 0x14f   :  { %v154_v33 = vadd.f32 %v265_v13, %v153_v32 }
 0x151   :  { %v162_v34 = vmax.f32 %v154_v33, 0.0 }
 0x155   :  { %217 = vmatmul.f32.gmra.mxu2 %v162_v34 }
 0x1a8   :  { %v200_v36 = vpop.f32.mrf.mxu2 }
 0x1a9   :  { %v201_v37 = vadd.f32 %v266_v35, %v200_v36 }
 0x1ab   :  { %221 = vst [vmem:[%s509_s7] sm:$0xff] %v201_v37 }
 0x1b0   :  { %v203_v38 = vpop.f32.mrf.mxu2 }
 0x1b1   :  { %v204_v39 = vadd.f32 %v266_v35, %v203_v38 }
 0x1b3   :  { %222 = vst [vmem:[%s509_s7 + $0x8] sm:$0xff] %v204_v39 }
 0x1b8   :  { %v206_v40 = vpop.f32.mrf.mxu2 }
 0x1b9   :  { %v207_v41 = vadd.f32 %v266_v35, %v206_v40 }
 0x1bb   :  { %223 = vst [vmem:[%s509_s7 + $0x10] sm:$0xff] %v207_v41 }
 0x1c0   :  { %v209_v42 = vpop.f32.mrf.mxu2 }
 0x1c1   :  { %v210_v43 = vadd.f32 %v266_v35, %v209_v42 }
 0x1c3   :  { %224 = vst [vmem:[%s509_s7 + $0x18] sm:$0xff] %v210_v43 }
 0x1c8   :  { %v212_v44 = vpop.f32.mrf.mxu2 }
 0x1c9   :  { %v213_v45 = vadd.f32 %v266_v35, %v212_v44 }
 0x1cb   :  { %225 = vst [vmem:[%s509_s7 + $0x20] sm:$0xff] %v213_v45 }
 0x1d0   :  { %v215_v46 = vpop.f32.mrf.mxu2 }
 0x1d1   :  { %v216_v47 = vadd.f32 %v266_v35, %v215_v46 }
 0x1d3   :  { %226 = vst [vmem:[%s509_s7 + $0x28] sm:$0xff] %v216_v47 }
 0x1d8   :  { %v218_v48 = vpop.f32.mrf.mxu2 }
 0x1d9   :  { %v219_v49 = vadd.f32 %v266_v35, %v218_v48 }
 0x1db   :  { %227 = vst [vmem:[%s509_s7 + $0x30] sm:$0xff] %v219_v49 }

</bundles_post_ra>
